<compile_context>
chip_gen: v6e
topology: v6e:2x2x1
jax: 0.10.0
libtpu: 0.0.40
codegen_flags: <defaults>
</compile_context>

<pallas_src>
import jax
import jax.numpy as jnp
from jax.experimental import pallas as pl
from jax.experimental.pallas import tpu as pltpu

_LANE = 128  # TPU lane width


def _global2local_kernel(origin_ref, gps_ref, out_ref):
    # (1, 128*D) origin row broadcast-subtracted from the (tile_rows, 128*D)
    # flattened GPS block. Pure VPU elementwise; the kernel is HBM-bound.
    out_ref[...] = gps_ref[...] - origin_ref[...]


def global2local(gps_coordinates: jax.Array, origin,
                 *, target_block_bytes: int = 4 * 1024 * 1024,
                 min_pallas_bytes: int = 256 * 1024) -> jax.Array:
    """Pallas implementation of Global2Local.forward.

    gps_coordinates: (N, D) array
    origin:          (D,)   array (broadcast over N)
    returns:         (N, D) == gps_coordinates - origin
    """
    n, d = gps_coordinates.shape
    dtype = gps_coordinates.dtype
    itemsize = jnp.dtype(dtype).itemsize
    origin_1d = jnp.asarray(origin, dtype=dtype).reshape(d)

    # Small-input bypass: XLA's fused elementwise already hits roofline and
    # avoids all pallas_call / layout-plumbing fixed costs.
    if n * d * itemsize < min_pallas_bytes:
        return gps_coordinates - origin_1d[None, :]

    # Points handled by the kernel (lane-dense layout needs multiples of 128);
    # the <=127-point tail (if any) is a plain XLA subtract — no full-array
    # pad or slice-back.
    n_main = (n // _LANE) * _LANE
    if n_main == 0:
        return gps_coordinates - origin_1d[None, :]
    gps_main = gps_coordinates if n_main == n else gps_coordinates[:n_main]

    # Sublane granularity: 8 / 16 / 32 rows for 4 / 2 / 1-byte dtypes;
    # clamp to >= 8 so 8-byte dtypes don't produce a zero tile.
    sub = max(8, (8 * 4) // max(itemsize, 1))

    row_elems = _LANE * d                 # one flattened row = 128 points
    row_bytes = row_elems * itemsize
    rows = n_main // _LANE

    # Rows per block: big enough to amortize the ~0.35 us per-grid-step
    # overhead, small enough that the double-buffered in+out working set
    # (4 x block) stays well under the 48 MiB scoped-VMEM limit we request.
    max_rows = max(sub, target_block_bytes // row_bytes)
    if rows <= max_rows:
        tile_rows = rows                  # single block == full extent
        grid = 1
    else:
        tile_rows = (max_rows // sub) * sub
        grid = pl.cdiv(rows, tile_rows)   # partial (masked) final block OK

    # Contiguous, free reshape for row-major (N, D): each row packs 128
    # consecutive points as [p0_x..p0_{d-1}, p1_x, ...].
    gps_flat = gps_main.reshape(rows, row_elems)

    # Origin tiled to match the interleaved row layout: [o_x..o_{d-1}] * 128.
    origin_row = jnp.tile(origin_1d, _LANE).reshape(1, row_elems)

    out_flat = pl.pallas_call(
        _global2local_kernel,
        out_shape=jax.ShapeDtypeStruct((rows, row_elems), dtype),
        grid_spec=pltpu.PrefetchScalarGridSpec(
            num_scalar_prefetch=0,
            grid=(grid,),
            in_specs=[
                # Same (1, 128*D) origin row for every grid step.
                pl.BlockSpec((1, row_elems), lambda i: (0, 0)),
                # Lane-dense GPS tile along the (flattened) point axis.
                pl.BlockSpec((tile_rows, row_elems), lambda i: (i, 0)),
            ],
            out_specs=pl.BlockSpec((tile_rows, row_elems), lambda i: (i, 0)),
        ),
        compiler_params=pltpu.CompilerParams(
            dimension_semantics=("parallel",),
            vmem_limit_bytes=48 * 1024 * 1024,
        ),
        cost_estimate=pl.CostEstimate(
            flops=rows * row_elems,
            transcendentals=0,
            bytes_accessed=2 * rows * row_bytes,
        ),
    )(origin_row, gps_flat)

    out_main = out_flat.reshape(n_main, d)
    if n_main == n:
        return out_main
    out_tail = gps_coordinates[n_main:] - origin_1d[None, :]
    return jnp.concatenate([out_main, out_tail], axis=0)


if __name__ == "__main__":
    key = jax.random.PRNGKey(0)
    k_pts, k_org = jax.random.split(key)

    N, D = 65536, 3  # large enough to take the Pallas path (~768 KiB f32)
    gps = jax.random.uniform(k_pts, (N, D), dtype=jnp.float32,
                             minval=-1000.0, maxval=1000.0)
    # Deterministic "origin" parameter (analogue of self.origin in __init__).
    origin = jax.random.uniform(k_org, (D,), dtype=jnp.float32,
                                minval=-1000.0, maxval=1000.0)
    ref = gps - origin[None, :]

    # 1) Main kernel path (N multiple of 128, single big block).
    out = jax.block_until_ready(global2local(gps, origin))
    assert out.shape == ref.shape
    assert jnp.allclose(out, ref, atol=1e-5, rtol=1e-5)

    # 2) Multi-block path with a partial (masked) final block.
    out_mb = jax.block_until_ready(
        global2local(gps, origin, target_block_bytes=64 * 1024))
    assert jnp.allclose(out_mb, ref, atol=1e-5, rtol=1e-5)

    # 3) Non-multiple-of-128 point count (XLA tail path, no full-array pad).
    gps_odd = gps[:65413]
    out_odd = jax.block_until_ready(global2local(gps_odd, origin))
    assert jnp.allclose(out_odd, ref[:65413], atol=1e-5, rtol=1e-5)

    # 4) Small-input bypass.
    gps_small = gps[:1024]
    out_small = jax.block_until_ready(global2local(gps_small, origin))
    assert jnp.allclose(out_small, ref[:1024], atol=1e-5, rtol=1e-5)

    print("KERNEL_OK")
</pallas_src>

<mosaic_0001>
module attributes {stable_mosaic.version = 11 : i64} {
  func.func @_global2local_kernel(%arg0: i32, %arg1: memref<1x384xf32, #tpu.memory_space<vmem>>, %arg2: memref<512x384xf32, #tpu.memory_space<vmem>>, %arg3: memref<512x384xf32, #tpu.memory_space<vmem>>) attributes {dimension_semantics = [#tpu.dimension_semantics<parallel>], iteration_bounds = array<i64: 1>, scalar_prefetch = 0 : i64, scratch_operands = 0 : i64, tpu.core_type = #tpu.core_type<tc>, window_params = [{pipeline_mode = #tpu.pipeline_mode<synchronous>, transform_indices = @transform_0, window_bounds = array<i64: 1, 384>}, {transform_indices = @transform_1, window_bounds = array<i64: 512, 384>}, {transform_indices = @transform_2, window_bounds = array<i64: 512, 384>}]} {
    %c0 = arith.constant 0 : index
    %c0_0 = arith.constant 0 : index
    %0 = vector.load %arg2[%c0, %c0_0] : memref<512x384xf32, #tpu.memory_space<vmem>>, vector<512x384xf32>
    %c0_1 = arith.constant 0 : index
    %c0_2 = arith.constant 0 : index
    %1 = vector.load %arg1[%c0_1, %c0_2] : memref<1x384xf32, #tpu.memory_space<vmem>>, vector<1x384xf32>
    %2 = vector.broadcast %1 : vector<1x384xf32> to vector<512x384xf32>
    %3 = arith.subf %0, %2 : vector<512x384xf32>
    %c0_3 = arith.constant 0 : index
    %c0_4 = arith.constant 0 : index
    %4 = vector.load %arg3[%c0_3, %c0_4] : memref<512x384xf32, #tpu.memory_space<vmem>>, vector<512x384xf32>
    tpu.vector_store %arg3[%c0_3, %c0_4], %3 {strides = array<i32>} : memref<512x384xf32, #tpu.memory_space<vmem>>, vector<512x384xf32>,
    return
  }
  func.func @transform_0(%arg0: i32) -> (i32, i32) {
    %c0_i32 = arith.constant 0 : i32
    %c0_i32_0 = arith.constant 0 : i32
    %c0_i32_1 = arith.constant 0 : i32
    return %c0_i32, %c0_i32_0 : i32, i32
  }
  func.func @transform_1(%arg0: i32) -> (i32, i32) {
    %c0_i32 = arith.constant 0 : i32
    %c0_i32_0 = arith.constant 0 : i32
    return %arg0, %c0_i32 : i32, i32
  }
  func.func @transform_2(%arg0: i32) -> (i32, i32) {
    %c0_i32 = arith.constant 0 : i32
    %c0_i32_0 = arith.constant 0 : i32
    return %arg0, %c0_i32 : i32, i32
  }
}

</mosaic_0001>

<bundles_post_ra>
// kernel: tpu_custom_call.1
= control target key start
LH: loop header
LB: loop body
LE: loop exit
PB: predicated region body
PF: predicated region fallthrough
CT: control target
= control target key end

     0   :  { %7 = vsyncpa [#allocation3], 0  ;;  %s953_s0 = inlined_call_operand.hbm [shape: f32[1,384], index: 0, kind: input, shape index: {}]   ;;  %s954_s1 = inlined_call_operand.hbm [shape: f32[512,384], index: 1, kind: input, shape index: {}]   ;;  %s955_s2 = inlined_call_operand.hbm [shape: f32[512,384], index: 2, kind: output, shape index: {}]  }
   0x1   :  { %8 = vsyncpa [#allocation6], 0 }
   0x2   :  { %9 = vsyncpa [#allocation4], 0  ;;  %s720_s9 = smov [#allocation2]   ;;  %s721_s11 = smov [#allocation5]  }
   0x3   :  { %s16_s10 = sshll.u32 %s720_s9, 4  ;;  %s25_s12 = sshll.u32 %s721_s11, 4  ;;  %s17_s10 = int_to_ptr.vmem [resolvable:$true] %s16_s10  ;;  %s26_s12 = int_to_ptr.vmem [resolvable:$true] %s25_s12 }
   0x4   :  { %s662_s13 = scalar_lea.vmem %s17_s10, 48  ;;  %s666_s14 = scalar_lea.vmem %s17_s10, 64 }
   0x5   :  { %p663_p0 = scmp.ne.s32.totalorder %s17_s10, %s662_s13  ;;  %p667_p1 = scmp.lt.s32.totalorder %s17_s10, %s17_s10 }
   0x6   :  { %p668_p2 = scmp.lt.s32.totalorder %s666_s14, %s662_s13 }
   0x8   :  { %p669_p3 = por %p668_p2, %p667_p1 }
   0xa   :  { %p670_p4 = pnand %p669_p3, %p663_p0 }
   0xc   :  { %673 = shalt.err (!%p670_p4)
}
   0xd   :  { %19 = dma.hbm_to_vmem [thread:$0]  %s953_s0, 48, %s17_s10, [#allocation3]  }
   0xe   :  { %s682_s17 = scalar_lea.vmem %s26_s12, 24576  ;;  %p687_p6 = scmp.lt.s32.totalorder %s26_s12, %s26_s12 }
   0xf   :  { %p683_p5 = scmp.ne.s32.totalorder %s26_s12, %s682_s17  ;;  %p688_p7 = scmp.lt.s32.totalorder %s682_s17, %s682_s17 }
  0x11   :  { %p689_p8 = por %p688_p7, %p687_p6 }
  0x13   :  { %p690_p9 = pnand %p689_p8, %p683_p5 }
  0x15   :  { %693 = shalt.err (!%p690_p9)
}
  0x16   :  { %s722_s18 = smov 384   ;;  %s723_s19 = smov 24  }
  0x17   :  { %31 = dma.hbm_to_vmem [thread:$0]  %s954_s1, 24576, %s26_s12, [#allocation6], %s722_s18, %s722_s18, %s723_s19  }
  0x18   :  { %714 = dma.done.wait [#allocation3], 48  }
  0x19   :  { %715 = vsyncadd [#allocation3], 4294967248 }
  0x1a   :  { %716 = dma.done.wait [#allocation6], 24576  }
  0x1b   :  { %717 = vsyncadd [#allocation6], 4294942720  ;;  %v232_v0 = vlaneseq  ;;  %v38_v5 = vld [vmem:[#allocation5] sm:$0xff]  ;;  %v230_v6 = vld [vmem:[#allocation2] sm:$0x7]  ;;  %s724_s0 = smov [#allocation7]  }
  0x1c   :  { %v39_v7 = vld [vmem:[#allocation5 + $0x8] sm:$0xff]  ;;  %v40_v10 = vld [vmem:[#allocation5 + $0x10] sm:$0xff]  ;;  %v41_v12 = vld [vmem:[#allocation5 + $0x18] sm:$0xff]  ;;  %s636_s1 = sshll.u32 %s724_s0, 4  ;;  %s637_s1 = int_to_ptr.vmem [resolvable:$true] %s636_s1 }
  0x1d   :  { %v233_v1 = vshrl.u32 %v232_v0, 7  ;;  %v42_v13 = vld [vmem:[#allocation5 + $0x20] sm:$0xff]  ;;  %v43_v14 = vld [vmem:[#allocation5 + $0x28] sm:$0xff]  ;;  %v44_v15 = vld [vmem:[#allocation5 + $0x30] sm:$0xff]  ;;  %s694_s22 = scalar_lea.vmem %s637_s1, 24576  ;;  %p699_p11 = scmp.lt.s32.totalorder %s637_s1, %s637_s1 }
  0x1e   :  { %v45_v16 = vld [vmem:[#allocation5 + $0x38] sm:$0xff]  ;;  %v46_v21 = vld [vmem:[#allocation5 + $0x40] sm:$0xff]  ;;  %v47_v22 = vld [vmem:[#allocation5 + $0x48] sm:$0xff]  ;;  %p695_p10 = scmp.ne.s32.totalorder %s637_s1, %s694_s22  ;;  %p700_p12 = scmp.lt.s32.totalorder %s694_s22, %s694_s22 }
  0x1f   :  { %v234_v2 = vsub.s32 0, %v233_v1  ;;  %v238_v3 = vsub.s32 1, %v233_v1  ;;  %v242_v4 = vsub.s32 2, %v233_v1  ;;  %v48_v23 = vld [vmem:[#allocation5 + $0x50] sm:$0xff]  ;;  %v49_v28 = vld [vmem:[#allocation5 + $0x58] sm:$0xff]  ;;  %v50_v29 = vld [vmem:[#allocation5 + $0x60] sm:$0xff] }
  0x20   :  { %v51_v30 = vld [vmem:[#allocation5 + $0x68] sm:$0xff]  ;;  %v52_v35 = vld [vmem:[#allocation5 + $0x70] sm:$0xff]  ;;  %v53_v36 = vld [vmem:[#allocation5 + $0x78] sm:$0xff]  ;;  %p701_p13 = por %p700_p12, %p699_p11 }
  0x21   :  { %v749_v8 = vrot.slane %v230_v6, %v234_v2  ;;  %v751_v9 = vrot.slane %v230_v6, %v238_v3  ;;  %v753_v11 = vrot.slane %v230_v6, %v242_v4  ;;  %v54_v37 = vld [vmem:[#allocation5 + $0x80] sm:$0xff]  ;;  %v55_v42 = vld [vmem:[#allocation5 + $0x88] sm:$0xff]  ;;  %v56_v43 = vld [vmem:[#allocation5 + $0x90] sm:$0xff] }
  0x22   :  { %v57_v44 = vld [vmem:[#allocation5 + $0x98] sm:$0xff]  ;;  %v58_v49 = vld [vmem:[#allocation5 + $0xa0] sm:$0xff]  ;;  %v59_v50 = vld [vmem:[#allocation5 + $0xa8] sm:$0xff]  ;;  %p702_p0 = pnand %p701_p13, %p695_p10 }
  0x23   :  { %v247_v17 = vsub.f32 %v38_v5, %v749_v8  ;;  %v248_v18 = vsub.f32 %v39_v7, %v751_v9  ;;  %v249_v19 = vsub.f32 %v40_v10, %v753_v11  ;;  %v250_v20 = vsub.f32 %v41_v12, %v749_v8  ;;  %v60_v51 = vld [vmem:[#allocation5 + $0xb0] sm:$0xff]  ;;  %v61_v55 = vld [vmem:[#allocation5 + $0xb8] sm:$0xff]  ;;  %v62_v56 = vld [vmem:[#allocation5 + $0xc0] sm:$0xff] }
  0x24   :  { %v251_v24 = vsub.f32 %v42_v13, %v751_v9  ;;  %v252_v25 = vsub.f32 %v43_v14, %v753_v11  ;;  %v253_v26 = vsub.f32 %v44_v15, %v749_v8  ;;  %v254_v27 = vsub.f32 %v45_v16, %v751_v9  ;;  %v63_v57 = vld [vmem:[#allocation5 + $0xc8] sm:$0xff]  ;;  %v64_v61 = vld [vmem:[#allocation5 + $0xd0] sm:$0xff]  ;;  %v65_v62 = vld [vmem:[#allocation5 + $0xd8] sm:$0xff] }
  0x25   :  { %439 = vst [vmem:[#allocation7] sm:$0xff] %v247_v17  ;;  %440 = vst [vmem:[#allocation7 + $0x8] sm:$0xff] %v248_v18  ;;  %v255_v31 = vsub.f32 %v46_v21, %v753_v11  ;;  %v256_v32 = vsub.f32 %v47_v22, %v749_v8  ;;  %v257_v33 = vsub.f32 %v48_v23, %v751_v9  ;;  %v66_v63 = vld [vmem:[#allocation5 + $0xe0] sm:$0xff]  ;;  %v67_v3 = vld [vmem:[#allocation5 + $0xe8] sm:$0xff] }
  0x26   :  { %441 = vst [vmem:[#allocation7 + $0x10] sm:$0xff] %v249_v19  ;;  %442 = vst [vmem:[#allocation7 + $0x18] sm:$0xff] %v250_v20  ;;  %v258_v34 = vsub.f32 %v49_v28, %v753_v11  ;;  %v259_v38 = vsub.f32 %v50_v29, %v749_v8  ;;  %v260_v39 = vsub.f32 %v51_v30, %v751_v9  ;;  %v68_v4 = vld [vmem:[#allocation5 + $0xf0] sm:$0xff]  ;;  %v69_v5 = vld [vmem:[#allocation5 + $0xf8] sm:$0xff] }
  0x27   :  { %443 = vst [vmem:[#allocation7 + $0x20] sm:$0xff] %v251_v24  ;;  %444 = vst [vmem:[#allocation7 + $0x28] sm:$0xff] %v252_v25  ;;  %v261_v40 = vsub.f32 %v52_v35, %v753_v11  ;;  %v262_v41 = vsub.f32 %v53_v36, %v749_v8  ;;  %v263_v45 = vsub.f32 %v54_v37, %v751_v9  ;;  %v70_v12 = vld [vmem:[#allocation5 + $0x100] sm:$0xff]  ;;  %v71_v13 = vld [vmem:[#allocation5 + $0x108] sm:$0xff] }
  0x28   :  { %445 = vst [vmem:[#allocation7 + $0x30] sm:$0xff] %v253_v26  ;;  %446 = vst [vmem:[#allocation7 + $0x38] sm:$0xff] %v254_v27  ;;  %v264_v46 = vsub.f32 %v55_v42, %v753_v11  ;;  %v265_v47 = vsub.f32 %v56_v43, %v749_v8  ;;  %v266_v48 = vsub.f32 %v57_v44, %v751_v9  ;;  %v72_v14 = vld [vmem:[#allocation5 + $0x110] sm:$0xff]  ;;  %v73_v18 = vld [vmem:[#allocation5 + $0x118] sm:$0xff] }
  0x29   :  { %447 = vst [vmem:[#allocation7 + $0x40] sm:$0xff] %v255_v31  ;;  %448 = vst [vmem:[#allocation7 + $0x48] sm:$0xff] %v256_v32  ;;  %v267_v52 = vsub.f32 %v58_v49, %v753_v11  ;;  %v268_v53 = vsub.f32 %v59_v50, %v749_v8  ;;  %v269_v54 = vsub.f32 %v60_v51, %v751_v9  ;;  %v74_v19 = vld [vmem:[#allocation5 + $0x120] sm:$0xff]  ;;  %v75_v20 = vld [vmem:[#allocation5 + $0x128] sm:$0xff] }
  0x2a   :  { %449 = vst [vmem:[#allocation7 + $0x50] sm:$0xff] %v257_v33  ;;  %450 = vst [vmem:[#allocation7 + $0x58] sm:$0xff] %v258_v34  ;;  %v270_v58 = vsub.f32 %v61_v55, %v753_v11  ;;  %v271_v59 = vsub.f32 %v62_v56, %v749_v8  ;;  %v272_v60 = vsub.f32 %v63_v57, %v751_v9  ;;  %v76_v24 = vld [vmem:[#allocation5 + $0x130] sm:$0xff]  ;;  %v77_v25 = vld [vmem:[#allocation5 + $0x138] sm:$0xff] }
  0x2b   :  { %451 = vst [vmem:[#allocation7 + $0x60] sm:$0xff] %v259_v38  ;;  %452 = vst [vmem:[#allocation7 + $0x68] sm:$0xff] %v260_v39  ;;  %v273_v0 = vsub.f32 %v64_v61, %v753_v11  ;;  %v274_v1 = vsub.f32 %v65_v62, %v749_v8  ;;  %v275_v2 = vsub.f32 %v66_v63, %v751_v9  ;;  %v78_v26 = vld [vmem:[#allocation5 + $0x140] sm:$0xff]  ;;  %v79_v30 = vld [vmem:[#allocation5 + $0x148] sm:$0xff] }
  0x2c   :  { %453 = vst [vmem:[#allocation7 + $0x70] sm:$0xff] %v261_v40  ;;  %454 = vst [vmem:[#allocation7 + $0x78] sm:$0xff] %v262_v41  ;;  %v276_v6 = vsub.f32 %v67_v3, %v753_v11  ;;  %v277_v7 = vsub.f32 %v68_v4, %v749_v8  ;;  %v278_v10 = vsub.f32 %v69_v5, %v751_v9  ;;  %v80_v31 = vld [vmem:[#allocation5 + $0x150] sm:$0xff]  ;;  %v81_v32 = vld [vmem:[#allocation5 + $0x158] sm:$0xff] }
  0x2d   :  { %455 = vst [vmem:[#allocation7 + $0x80] sm:$0xff] %v263_v45  ;;  %456 = vst [vmem:[#allocation7 + $0x88] sm:$0xff] %v264_v46  ;;  %v279_v15 = vsub.f32 %v70_v12, %v753_v11  ;;  %v280_v16 = vsub.f32 %v71_v13, %v749_v8  ;;  %v281_v17 = vsub.f32 %v72_v14, %v751_v9  ;;  %v82_v36 = vld [vmem:[#allocation5 + $0x160] sm:$0xff]  ;;  %v83_v37 = vld [vmem:[#allocation5 + $0x168] sm:$0xff] }
  0x2e   :  { %457 = vst [vmem:[#allocation7 + $0x90] sm:$0xff] %v265_v47  ;;  %458 = vst [vmem:[#allocation7 + $0x98] sm:$0xff] %v266_v48  ;;  %v282_v21 = vsub.f32 %v73_v18, %v753_v11  ;;  %v283_v22 = vsub.f32 %v74_v19, %v749_v8  ;;  %v284_v23 = vsub.f32 %v75_v20, %v751_v9  ;;  %v84_v38 = vld [vmem:[#allocation5 + $0x170] sm:$0xff]  ;;  %v85_v42 = vld [vmem:[#allocation5 + $0x178] sm:$0xff] }
  0x2f   :  { %459 = vst [vmem:[#allocation7 + $0xa0] sm:$0xff] %v267_v52  ;;  %460 = vst [vmem:[#allocation7 + $0xa8] sm:$0xff] %v268_v53  ;;  %v285_v27 = vsub.f32 %v76_v24, %v753_v11  ;;  %v286_v28 = vsub.f32 %v77_v25, %v749_v8  ;;  %v287_v29 = vsub.f32 %v78_v26, %v751_v9  ;;  %v86_v43 = vld [vmem:[#allocation5 + $0x180] sm:$0xff]  ;;  %v87_v44 = vld [vmem:[#allocation5 + $0x188] sm:$0xff] }
  0x30   :  { %461 = vst [vmem:[#allocation7 + $0xb0] sm:$0xff] %v269_v54  ;;  %462 = vst [vmem:[#allocation7 + $0xb8] sm:$0xff] %v270_v58  ;;  %v288_v33 = vsub.f32 %v79_v30, %v753_v11  ;;  %v289_v34 = vsub.f32 %v80_v31, %v749_v8  ;;  %v290_v35 = vsub.f32 %v81_v32, %v751_v9  ;;  %v88_v48 = vld [vmem:[#allocation5 + $0x190] sm:$0xff]  ;;  %v89_v49 = vld [vmem:[#allocation5 + $0x198] sm:$0xff] }
  0x31   :  { %463 = vst [vmem:[#allocation7 + $0xc0] sm:$0xff] %v271_v59  ;;  %464 = vst [vmem:[#allocation7 + $0xc8] sm:$0xff] %v272_v60  ;;  %v291_v39 = vsub.f32 %v82_v36, %v753_v11  ;;  %v292_v40 = vsub.f32 %v83_v37, %v749_v8  ;;  %v293_v41 = vsub.f32 %v84_v38, %v751_v9  ;;  %v90_v50 = vld [vmem:[#allocation5 + $0x1a0] sm:$0xff]  ;;  %v91_v54 = vld [vmem:[#allocation5 + $0x1a8] sm:$0xff] }
  0x32   :  { %465 = vst [vmem:[#allocation7 + $0xd0] sm:$0xff] %v273_v0  ;;  %466 = vst [vmem:[#allocation7 + $0xd8] sm:$0xff] %v274_v1  ;;  %v294_v45 = vsub.f32 %v85_v42, %v753_v11  ;;  %v295_v46 = vsub.f32 %v86_v43, %v749_v8  ;;  %v296_v47 = vsub.f32 %v87_v44, %v751_v9  ;;  %v92_v55 = vld [vmem:[#allocation5 + $0x1b0] sm:$0xff]  ;;  %v93_v56 = vld [vmem:[#allocation5 + $0x1b8] sm:$0xff] }
  0x33   :  { %467 = vst [vmem:[#allocation7 + $0xe0] sm:$0xff] %v275_v2  ;;  %468 = vst [vmem:[#allocation7 + $0xe8] sm:$0xff] %v276_v6  ;;  %v297_v51 = vsub.f32 %v88_v48, %v753_v11  ;;  %v298_v52 = vsub.f32 %v89_v49, %v749_v8  ;;  %v299_v53 = vsub.f32 %v90_v50, %v751_v9  ;;  %v94_v60 = vld [vmem:[#allocation5 + $0x1c0] sm:$0xff]  ;;  %v95_v61 = vld [vmem:[#allocation5 + $0x1c8] sm:$0xff] }
  0x34   :  { %469 = vst [vmem:[#allocation7 + $0xf0] sm:$0xff] %v277_v7  ;;  %470 = vst [vmem:[#allocation7 + $0xf8] sm:$0xff] %v278_v10  ;;  %v300_v57 = vsub.f32 %v91_v54, %v753_v11  ;;  %v301_v58 = vsub.f32 %v92_v55, %v749_v8  ;;  %v302_v59 = vsub.f32 %v93_v56, %v751_v9  ;;  %v96_v62 = vld [vmem:[#allocation5 + $0x1d0] sm:$0xff]  ;;  %v97_v2 = vld [vmem:[#allocation5 + $0x1d8] sm:$0xff] }
  0x35   :  { %471 = vst [vmem:[#allocation7 + $0x100] sm:$0xff] %v279_v15  ;;  %472 = vst [vmem:[#allocation7 + $0x108] sm:$0xff] %v280_v16  ;;  %v303_v63 = vsub.f32 %v94_v60, %v753_v11  ;;  %v304_v0 = vsub.f32 %v95_v61, %v749_v8  ;;  %v305_v1 = vsub.f32 %v96_v62, %v751_v9  ;;  %v98_v3 = vld [vmem:[#allocation5 + $0x1e0] sm:$0xff]  ;;  %v99_v4 = vld [vmem:[#allocation5 + $0x1e8] sm:$0xff] }
  0x36   :  { %473 = vst [vmem:[#allocation7 + $0x110] sm:$0xff] %v281_v17  ;;  %474 = vst [vmem:[#allocation7 + $0x118] sm:$0xff] %v282_v21  ;;  %v306_v5 = vsub.f32 %v97_v2, %v753_v11  ;;  %v307_v6 = vsub.f32 %v98_v3, %v749_v8  ;;  %v308_v7 = vsub.f32 %v99_v4, %v751_v9  ;;  %v100_v10 = vld [vmem:[#allocation5 + $0x1f0] sm:$0xff]  ;;  %v101_v12 = vld [vmem:[#allocation5 + $0x1f8] sm:$0xff] }
  0x37   :  { %475 = vst [vmem:[#allocation7 + $0x120] sm:$0xff] %v283_v22  ;;  %476 = vst [vmem:[#allocation7 + $0x128] sm:$0xff] %v284_v23  ;;  %v102_v13 = vld [vmem:[#allocation5 + $0x200] sm:$0xff]  ;;  %v309_v14 = vsub.f32 %v100_v10, %v753_v11  ;;  %v310_v15 = vsub.f32 %v101_v12, %v749_v8  ;;  %v103_v17 = vld [vmem:[#allocation5 + $0x208] sm:$0xff] }
  0x38   :  { %477 = vst [vmem:[#allocation7 + $0x130] sm:$0xff] %v285_v27  ;;  %478 = vst [vmem:[#allocation7 + $0x138] sm:$0xff] %v286_v28  ;;  %v311_v16 = vsub.f32 %v102_v13, %v751_v9  ;;  %v104_v18 = vld [vmem:[#allocation5 + $0x210] sm:$0xff]  ;;  %v105_v19 = vld [vmem:[#allocation5 + $0x218] sm:$0xff]  ;;  %v312_v20 = vsub.f32 %v103_v17, %v753_v11 }
  0x39   :  { %479 = vst [vmem:[#allocation7 + $0x140] sm:$0xff] %v287_v29  ;;  %480 = vst [vmem:[#allocation7 + $0x148] sm:$0xff] %v288_v33  ;;  %v313_v21 = vsub.f32 %v104_v18, %v749_v8  ;;  %v314_v22 = vsub.f32 %v105_v19, %v751_v9  ;;  %v106_v23 = vld [vmem:[#allocation5 + $0x220] sm:$0xff]  ;;  %v107_v24 = vld [vmem:[#allocation5 + $0x228] sm:$0xff] }
  0x3a   :  { %481 = vst [vmem:[#allocation7 + $0x150] sm:$0xff] %v289_v34  ;;  %482 = vst [vmem:[#allocation7 + $0x158] sm:$0xff] %v290_v35  ;;  %v108_v25 = vld [vmem:[#allocation5 + $0x230] sm:$0xff]  ;;  %v315_v26 = vsub.f32 %v106_v23, %v753_v11  ;;  %v316_v27 = vsub.f32 %v107_v24, %v749_v8  ;;  %v109_v29 = vld [vmem:[#allocation5 + $0x238] sm:$0xff] }
  0x3b   :  { %483 = vst [vmem:[#allocation7 + $0x160] sm:$0xff] %v291_v39  ;;  %484 = vst [vmem:[#allocation7 + $0x168] sm:$0xff] %v292_v40  ;;  %v317_v28 = vsub.f32 %v108_v25, %v751_v9  ;;  %v110_v30 = vld [vmem:[#allocation5 + $0x240] sm:$0xff]  ;;  %v111_v31 = vld [vmem:[#allocation5 + $0x248] sm:$0xff]  ;;  %v318_v32 = vsub.f32 %v109_v29, %v753_v11 }
  0x3c   :  { %485 = vst [vmem:[#allocation7 + $0x170] sm:$0xff] %v293_v41  ;;  %486 = vst [vmem:[#allocation7 + $0x178] sm:$0xff] %v294_v45  ;;  %v319_v33 = vsub.f32 %v110_v30, %v749_v8  ;;  %v320_v34 = vsub.f32 %v111_v31, %v751_v9  ;;  %v112_v35 = vld [vmem:[#allocation5 + $0x250] sm:$0xff]  ;;  %v113_v36 = vld [vmem:[#allocation5 + $0x258] sm:$0xff] }
  0x3d   :  { %487 = vst [vmem:[#allocation7 + $0x180] sm:$0xff] %v295_v46  ;;  %488 = vst [vmem:[#allocation7 + $0x188] sm:$0xff] %v296_v47  ;;  %v114_v37 = vld [vmem:[#allocation5 + $0x260] sm:$0xff]  ;;  %v321_v38 = vsub.f32 %v112_v35, %v753_v11  ;;  %v322_v39 = vsub.f32 %v113_v36, %v749_v8  ;;  %v115_v41 = vld [vmem:[#allocation5 + $0x268] sm:$0xff] }
  0x3e   :  { %489 = vst [vmem:[#allocation7 + $0x190] sm:$0xff] %v297_v51  ;;  %490 = vst [vmem:[#allocation7 + $0x198] sm:$0xff] %v298_v52  ;;  %v323_v40 = vsub.f32 %v114_v37, %v751_v9  ;;  %v116_v42 = vld [vmem:[#allocation5 + $0x270] sm:$0xff]  ;;  %v117_v43 = vld [vmem:[#allocation5 + $0x278] sm:$0xff]  ;;  %v324_v44 = vsub.f32 %v115_v41, %v753_v11 }
  0x3f   :  { %491 = vst [vmem:[#allocation7 + $0x1a0] sm:$0xff] %v299_v53  ;;  %492 = vst [vmem:[#allocation7 + $0x1a8] sm:$0xff] %v300_v57  ;;  %v325_v45 = vsub.f32 %v116_v42, %v749_v8  ;;  %v326_v46 = vsub.f32 %v117_v43, %v751_v9  ;;  %v118_v47 = vld [vmem:[#allocation5 + $0x280] sm:$0xff]  ;;  %v119_v48 = vld [vmem:[#allocation5 + $0x288] sm:$0xff] }
  0x40   :  { %493 = vst [vmem:[#allocation7 + $0x1b0] sm:$0xff] %v301_v58  ;;  %494 = vst [vmem:[#allocation7 + $0x1b8] sm:$0xff] %v302_v59  ;;  %v120_v49 = vld [vmem:[#allocation5 + $0x290] sm:$0xff]  ;;  %v327_v50 = vsub.f32 %v118_v47, %v753_v11  ;;  %v328_v51 = vsub.f32 %v119_v48, %v749_v8  ;;  %v121_v53 = vld [vmem:[#allocation5 + $0x298] sm:$0xff] }
  0x41   :  { %495 = vst [vmem:[#allocation7 + $0x1c0] sm:$0xff] %v303_v63  ;;  %496 = vst [vmem:[#allocation7 + $0x1c8] sm:$0xff] %v304_v0  ;;  %v329_v52 = vsub.f32 %v120_v49, %v751_v9  ;;  %v122_v54 = vld [vmem:[#allocation5 + $0x2a0] sm:$0xff]  ;;  %v123_v55 = vld [vmem:[#allocation5 + $0x2a8] sm:$0xff]  ;;  %v330_v56 = vsub.f32 %v121_v53, %v753_v11 }
  0x42   :  { %497 = vst [vmem:[#allocation7 + $0x1d0] sm:$0xff] %v305_v1  ;;  %498 = vst [vmem:[#allocation7 + $0x1d8] sm:$0xff] %v306_v5  ;;  %v331_v57 = vsub.f32 %v122_v54, %v749_v8  ;;  %v332_v58 = vsub.f32 %v123_v55, %v751_v9  ;;  %v124_v59 = vld [vmem:[#allocation5 + $0x2b0] sm:$0xff]  ;;  %v125_v60 = vld [vmem:[#allocation5 + $0x2b8] sm:$0xff] }
  0x43   :  { %499 = vst [vmem:[#allocation7 + $0x1e0] sm:$0xff] %v307_v6  ;;  %500 = vst [vmem:[#allocation7 + $0x1e8] sm:$0xff] %v308_v7  ;;  %v126_v61 = vld [vmem:[#allocation5 + $0x2c0] sm:$0xff]  ;;  %v333_v62 = vsub.f32 %v124_v59, %v753_v11  ;;  %v334_v63 = vsub.f32 %v125_v60, %v749_v8  ;;  %v127_v1 = vld [vmem:[#allocation5 + $0x2c8] sm:$0xff] }
  0x44   :  { %501 = vst [vmem:[#allocation7 + $0x1f0] sm:$0xff] %v309_v14  ;;  %502 = vst [vmem:[#allocation7 + $0x1f8] sm:$0xff] %v310_v15  ;;  %v335_v0 = vsub.f32 %v126_v61, %v751_v9  ;;  %v128_v2 = vld [vmem:[#allocation5 + $0x2d0] sm:$0xff]  ;;  %v129_v3 = vld [vmem:[#allocation5 + $0x2d8] sm:$0xff]  ;;  %v336_v4 = vsub.f32 %v127_v1, %v753_v11 }
  0x45   :  { %503 = vst [vmem:[#allocation7 + $0x200] sm:$0xff] %v311_v16  ;;  %504 = vst [vmem:[#allocation7 + $0x208] sm:$0xff] %v312_v20  ;;  %v337_v5 = vsub.f32 %v128_v2, %v749_v8  ;;  %v338_v6 = vsub.f32 %v129_v3, %v751_v9  ;;  %v130_v7 = vld [vmem:[#allocation5 + $0x2e0] sm:$0xff]  ;;  %v131_v10 = vld [vmem:[#allocation5 + $0x2e8] sm:$0xff] }
  0x46   :  { %505 = vst [vmem:[#allocation7 + $0x210] sm:$0xff] %v313_v21  ;;  %506 = vst [vmem:[#allocation7 + $0x218] sm:$0xff] %v314_v22  ;;  %v132_v12 = vld [vmem:[#allocation5 + $0x2f0] sm:$0xff]  ;;  %v339_v13 = vsub.f32 %v130_v7, %v753_v11  ;;  %v340_v14 = vsub.f32 %v131_v10, %v749_v8  ;;  %v133_v16 = vld [vmem:[#allocation5 + $0x2f8] sm:$0xff] }
  0x47   :  { %507 = vst [vmem:[#allocation7 + $0x220] sm:$0xff] %v315_v26  ;;  %508 = vst [vmem:[#allocation7 + $0x228] sm:$0xff] %v316_v27  ;;  %v341_v15 = vsub.f32 %v132_v12, %v751_v9  ;;  %v134_v17 = vld [vmem:[#allocation5 + $0x300] sm:$0xff]  ;;  %v135_v18 = vld [vmem:[#allocation5 + $0x308] sm:$0xff]  ;;  %v342_v19 = vsub.f32 %v133_v16, %v753_v11 }
  0x48   :  { %509 = vst [vmem:[#allocation7 + $0x230] sm:$0xff] %v317_v28  ;;  %510 = vst [vmem:[#allocation7 + $0x238] sm:$0xff] %v318_v32  ;;  %v343_v20 = vsub.f32 %v134_v17, %v749_v8  ;;  %v344_v21 = vsub.f32 %v135_v18, %v751_v9  ;;  %v136_v22 = vld [vmem:[#allocation5 + $0x310] sm:$0xff]  ;;  %v137_v23 = vld [vmem:[#allocation5 + $0x318] sm:$0xff] }
  0x49   :  { %511 = vst [vmem:[#allocation7 + $0x240] sm:$0xff] %v319_v33  ;;  %512 = vst [vmem:[#allocation7 + $0x248] sm:$0xff] %v320_v34  ;;  %v138_v24 = vld [vmem:[#allocation5 + $0x320] sm:$0xff]  ;;  %v345_v25 = vsub.f32 %v136_v22, %v753_v11  ;;  %v346_v26 = vsub.f32 %v137_v23, %v749_v8  ;;  %v139_v28 = vld [vmem:[#allocation5 + $0x328] sm:$0xff] }
  0x4a   :  { %513 = vst [vmem:[#allocation7 + $0x250] sm:$0xff] %v321_v38  ;;  %514 = vst [vmem:[#allocation7 + $0x258] sm:$0xff] %v322_v39  ;;  %v347_v27 = vsub.f32 %v138_v24, %v751_v9  ;;  %v140_v29 = vld [vmem:[#allocation5 + $0x330] sm:$0xff]  ;;  %v141_v30 = vld [vmem:[#allocation5 + $0x338] sm:$0xff]  ;;  %v348_v31 = vsub.f32 %v139_v28, %v753_v11 }
  0x4b   :  { %515 = vst [vmem:[#allocation7 + $0x260] sm:$0xff] %v323_v40  ;;  %516 = vst [vmem:[#allocation7 + $0x268] sm:$0xff] %v324_v44  ;;  %v349_v32 = vsub.f32 %v140_v29, %v749_v8  ;;  %v350_v33 = vsub.f32 %v141_v30, %v751_v9  ;;  %v142_v34 = vld [vmem:[#allocation5 + $0x340] sm:$0xff]  ;;  %v143_v35 = vld [vmem:[#allocation5 + $0x348] sm:$0xff] }
  0x4c   :  { %517 = vst [vmem:[#allocation7 + $0x270] sm:$0xff] %v325_v45  ;;  %518 = vst [vmem:[#allocation7 + $0x278] sm:$0xff] %v326_v46  ;;  %v144_v36 = vld [vmem:[#allocation5 + $0x350] sm:$0xff]  ;;  %v351_v37 = vsub.f32 %v142_v34, %v753_v11  ;;  %v352_v38 = vsub.f32 %v143_v35, %v749_v8  ;;  %v145_v40 = vld [vmem:[#allocation5 + $0x358] sm:$0xff] }
  0x4d   :  { %519 = vst [vmem:[#allocation7 + $0x280] sm:$0xff] %v327_v50  ;;  %520 = vst [vmem:[#allocation7 + $0x288] sm:$0xff] %v328_v51  ;;  %v353_v39 = vsub.f32 %v144_v36, %v751_v9  ;;  %v146_v41 = vld [vmem:[#allocation5 + $0x360] sm:$0xff]  ;;  %v147_v42 = vld [vmem:[#allocation5 + $0x368] sm:$0xff]  ;;  %v354_v43 = vsub.f32 %v145_v40, %v753_v11 }
  0x4e   :  { %521 = vst [vmem:[#allocation7 + $0x290] sm:$0xff] %v329_v52  ;;  %522 = vst [vmem:[#allocation7 + $0x298] sm:$0xff] %v330_v56  ;;  %v355_v44 = vsub.f32 %v146_v41, %v749_v8  ;;  %v356_v45 = vsub.f32 %v147_v42, %v751_v9  ;;  %v148_v46 = vld [vmem:[#allocation5 + $0x370] sm:$0xff]  ;;  %v149_v47 = vld [vmem:[#allocation5 + $0x378] sm:$0xff] }
  0x4f   :  { %523 = vst [vmem:[#allocation7 + $0x2a0] sm:$0xff] %v331_v57  ;;  %524 = vst [vmem:[#allocation7 + $0x2a8] sm:$0xff] %v332_v58  ;;  %v150_v48 = vld [vmem:[#allocation5 + $0x380] sm:$0xff]  ;;  %v357_v49 = vsub.f32 %v148_v46, %v753_v11  ;;  %v358_v50 = vsub.f32 %v149_v47, %v749_v8  ;;  %v151_v52 = vld [vmem:[#allocation5 + $0x388] sm:$0xff] }
  0x50   :  { %525 = vst [vmem:[#allocation7 + $0x2b0] sm:$0xff] %v333_v62  ;;  %526 = vst [vmem:[#allocation7 + $0x2b8] sm:$0xff] %v334_v63  ;;  %v359_v51 = vsub.f32 %v150_v48, %v751_v9  ;;  %v152_v53 = vld [vmem:[#allocation5 + $0x390] sm:$0xff]  ;;  %v153_v54 = vld [vmem:[#allocation5 + $0x398] sm:$0xff]  ;;  %v360_v55 = vsub.f32 %v151_v52, %v753_v11 }
  0x51   :  { %527 = vst [vmem:[#allocation7 + $0x2c0] sm:$0xff] %v335_v0  ;;  %528 = vst [vmem:[#allocation7 + $0x2c8] sm:$0xff] %v336_v4  ;;  %v361_v56 = vsub.f32 %v152_v53, %v749_v8  ;;  %v362_v57 = vsub.f32 %v153_v54, %v751_v9  ;;  %v154_v58 = vld [vmem:[#allocation5 + $0x3a0] sm:$0xff]  ;;  %v155_v59 = vld [vmem:[#allocation5 + $0x3a8] sm:$0xff] }
  0x52   :  { %529 = vst [vmem:[#allocation7 + $0x2d0] sm:$0xff] %v337_v5  ;;  %530 = vst [vmem:[#allocation7 + $0x2d8] sm:$0xff] %v338_v6  ;;  %v156_v60 = vld [vmem:[#allocation5 + $0x3b0] sm:$0xff]  ;;  %v363_v61 = vsub.f32 %v154_v58, %v753_v11  ;;  %v364_v62 = vsub.f32 %v155_v59, %v749_v8  ;;  %v157_v0 = vld [vmem:[#allocation5 + $0x3b8] sm:$0xff] }
  0x53   :  { %531 = vst [vmem:[#allocation7 + $0x2e0] sm:$0xff] %v339_v13  ;;  %532 = vst [vmem:[#allocation7 + $0x2e8] sm:$0xff] %v340_v14  ;;  %v365_v63 = vsub.f32 %v156_v60, %v751_v9  ;;  %v158_v1 = vld [vmem:[#allocation5 + $0x3c0] sm:$0xff]  ;;  %v159_v2 = vld [vmem:[#allocation5 + $0x3c8] sm:$0xff]  ;;  %v366_v3 = vsub.f32 %v157_v0, %v753_v11 }
  0x54   :  { %533 = vst [vmem:[#allocation7 + $0x2f0] sm:$0xff] %v341_v15  ;;  %534 = vst [vmem:[#allocation7 + $0x2f8] sm:$0xff] %v342_v19  ;;  %v367_v4 = vsub.f32 %v158_v1, %v749_v8  ;;  %v368_v5 = vsub.f32 %v159_v2, %v751_v9  ;;  %v160_v6 = vld [vmem:[#allocation5 + $0x3d0] sm:$0xff]  ;;  %v161_v7 = vld [vmem:[#allocation5 + $0x3d8] sm:$0xff] }
  0x55   :  { %535 = vst [vmem:[#allocation7 + $0x300] sm:$0xff] %v343_v20  ;;  %536 = vst [vmem:[#allocation7 + $0x308] sm:$0xff] %v344_v21  ;;  %v162_v10 = vld [vmem:[#allocation5 + $0x3e0] sm:$0xff]  ;;  %v369_v12 = vsub.f32 %v160_v6, %v753_v11  ;;  %v370_v13 = vsub.f32 %v161_v7, %v749_v8  ;;  %v163_v15 = vld [vmem:[#allocation5 + $0x3e8] sm:$0xff] }
  0x56   :  { %537 = vst [vmem:[#allocation7 + $0x310] sm:$0xff] %v345_v25  ;;  %538 = vst [vmem:[#allocation7 + $0x318] sm:$0xff] %v346_v26  ;;  %v371_v14 = vsub.f32 %v162_v10, %v751_v9  ;;  %v164_v16 = vld [vmem:[#allocation5 + $0x3f0] sm:$0xff]  ;;  %v165_v17 = vld [vmem:[#allocation5 + $0x3f8] sm:$0xff]  ;;  %v372_v18 = vsub.f32 %v163_v15, %v753_v11 }
  0x57   :  { %539 = vst [vmem:[#allocation7 + $0x320] sm:$0xff] %v347_v27  ;;  %540 = vst [vmem:[#allocation7 + $0x328] sm:$0xff] %v348_v31  ;;  %v373_v19 = vsub.f32 %v164_v16, %v749_v8  ;;  %v374_v20 = vsub.f32 %v165_v17, %v751_v9  ;;  %v166_v21 = vld [vmem:[#allocation5 + $0x400] sm:$0xff]  ;;  %v167_v22 = vld [vmem:[#allocation5 + $0x408] sm:$0xff] }
  0x58   :  { %541 = vst [vmem:[#allocation7 + $0x330] sm:$0xff] %v349_v32  ;;  %542 = vst [vmem:[#allocation7 + $0x338] sm:$0xff] %v350_v33  ;;  %v168_v23 = vld [vmem:[#allocation5 + $0x410] sm:$0xff]  ;;  %v375_v24 = vsub.f32 %v166_v21, %v753_v11  ;;  %v376_v25 = vsub.f32 %v167_v22, %v749_v8  ;;  %v169_v27 = vld [vmem:[#allocation5 + $0x418] sm:$0xff] }
  0x59   :  { %543 = vst [vmem:[#allocation7 + $0x340] sm:$0xff] %v351_v37  ;;  %544 = vst [vmem:[#allocation7 + $0x348] sm:$0xff] %v352_v38  ;;  %v377_v26 = vsub.f32 %v168_v23, %v751_v9  ;;  %v170_v28 = vld [vmem:[#allocation5 + $0x420] sm:$0xff]  ;;  %v171_v29 = vld [vmem:[#allocation5 + $0x428] sm:$0xff]  ;;  %v378_v30 = vsub.f32 %v169_v27, %v753_v11 }
  0x5a   :  { %545 = vst [vmem:[#allocation7 + $0x350] sm:$0xff] %v353_v39  ;;  %546 = vst [vmem:[#allocation7 + $0x358] sm:$0xff] %v354_v43  ;;  %v379_v31 = vsub.f32 %v170_v28, %v749_v8  ;;  %v380_v32 = vsub.f32 %v171_v29, %v751_v9  ;;  %v172_v33 = vld [vmem:[#allocation5 + $0x430] sm:$0xff]  ;;  %v173_v34 = vld [vmem:[#allocation5 + $0x438] sm:$0xff] }
  0x5b   :  { %547 = vst [vmem:[#allocation7 + $0x360] sm:$0xff] %v355_v44  ;;  %548 = vst [vmem:[#allocation7 + $0x368] sm:$0xff] %v356_v45  ;;  %v174_v35 = vld [vmem:[#allocation5 + $0x440] sm:$0xff]  ;;  %v381_v36 = vsub.f32 %v172_v33, %v753_v11  ;;  %v382_v37 = vsub.f32 %v173_v34, %v749_v8  ;;  %v175_v39 = vld [vmem:[#allocation5 + $0x448] sm:$0xff] }
  0x5c   :  { %549 = vst [vmem:[#allocation7 + $0x370] sm:$0xff] %v357_v49  ;;  %550 = vst [vmem:[#allocation7 + $0x378] sm:$0xff] %v358_v50  ;;  %v383_v38 = vsub.f32 %v174_v35, %v751_v9  ;;  %v176_v40 = vld [vmem:[#allocation5 + $0x450] sm:$0xff]  ;;  %v177_v41 = vld [vmem:[#allocation5 + $0x458] sm:$0xff]  ;;  %v384_v42 = vsub.f32 %v175_v39, %v753_v11 }
  0x5d   :  { %551 = vst [vmem:[#allocation7 + $0x380] sm:$0xff] %v359_v51  ;;  %552 = vst [vmem:[#allocation7 + $0x388] sm:$0xff] %v360_v55  ;;  %v385_v43 = vsub.f32 %v176_v40, %v749_v8  ;;  %v386_v44 = vsub.f32 %v177_v41, %v751_v9  ;;  %v178_v45 = vld [vmem:[#allocation5 + $0x460] sm:$0xff]  ;;  %v179_v46 = vld [vmem:[#allocation5 + $0x468] sm:$0xff] }
  0x5e   :  { %553 = vst [vmem:[#allocation7 + $0x390] sm:$0xff] %v361_v56  ;;  %554 = vst [vmem:[#allocation7 + $0x398] sm:$0xff] %v362_v57  ;;  %v180_v47 = vld [vmem:[#allocation5 + $0x470] sm:$0xff]  ;;  %v387_v48 = vsub.f32 %v178_v45, %v753_v11  ;;  %v388_v49 = vsub.f32 %v179_v46, %v749_v8  ;;  %v181_v51 = vld [vmem:[#allocation5 + $0x478] sm:$0xff] }
  0x5f   :  { %555 = vst [vmem:[#allocation7 + $0x3a0] sm:$0xff] %v363_v61  ;;  %556 = vst [vmem:[#allocation7 + $0x3a8] sm:$0xff] %v364_v62  ;;  %v389_v50 = vsub.f32 %v180_v47, %v751_v9  ;;  %v182_v52 = vld [vmem:[#allocation5 + $0x480] sm:$0xff]  ;;  %v183_v53 = vld [vmem:[#allocation5 + $0x488] sm:$0xff]  ;;  %v390_v54 = vsub.f32 %v181_v51, %v753_v11 }
  0x60   :  { %557 = vst [vmem:[#allocation7 + $0x3b0] sm:$0xff] %v365_v63  ;;  %558 = vst [vmem:[#allocation7 + $0x3b8] sm:$0xff] %v366_v3  ;;  %v391_v55 = vsub.f32 %v182_v52, %v749_v8  ;;  %v392_v56 = vsub.f32 %v183_v53, %v751_v9  ;;  %v184_v57 = vld [vmem:[#allocation5 + $0x490] sm:$0xff]  ;;  %v185_v58 = vld [vmem:[#allocation5 + $0x498] sm:$0xff] }
  0x61   :  { %559 = vst [vmem:[#allocation7 + $0x3c0] sm:$0xff] %v367_v4  ;;  %560 = vst [vmem:[#allocation7 + $0x3c8] sm:$0xff] %v368_v5  ;;  %v186_v59 = vld [vmem:[#allocation5 + $0x4a0] sm:$0xff]  ;;  %v393_v60 = vsub.f32 %v184_v57, %v753_v11  ;;  %v394_v61 = vsub.f32 %v185_v58, %v749_v8  ;;  %v187_v63 = vld [vmem:[#allocation5 + $0x4a8] sm:$0xff] }
  0x62   :  { %561 = vst [vmem:[#allocation7 + $0x3d0] sm:$0xff] %v369_v12  ;;  %562 = vst [vmem:[#allocation7 + $0x3d8] sm:$0xff] %v370_v13  ;;  %v395_v62 = vsub.f32 %v186_v59, %v751_v9  ;;  %v188_v0 = vld [vmem:[#allocation5 + $0x4b0] sm:$0xff]  ;;  %v189_v1 = vld [vmem:[#allocation5 + $0x4b8] sm:$0xff]  ;;  %v396_v2 = vsub.f32 %v187_v63, %v753_v11 }
  0x63   :  { %563 = vst [vmem:[#allocation7 + $0x3e0] sm:$0xff] %v371_v14  ;;  %564 = vst [vmem:[#allocation7 + $0x3e8] sm:$0xff] %v372_v18  ;;  %v397_v3 = vsub.f32 %v188_v0, %v749_v8  ;;  %v398_v4 = vsub.f32 %v189_v1, %v751_v9  ;;  %v190_v5 = vld [vmem:[#allocation5 + $0x4c0] sm:$0xff]  ;;  %v191_v6 = vld [vmem:[#allocation5 + $0x4c8] sm:$0xff] }
  0x64   :  { %565 = vst [vmem:[#allocation7 + $0x3f0] sm:$0xff] %v373_v19  ;;  %566 = vst [vmem:[#allocation7 + $0x3f8] sm:$0xff] %v374_v20  ;;  %v192_v7 = vld [vmem:[#allocation5 + $0x4d0] sm:$0xff]  ;;  %v399_v10 = vsub.f32 %v190_v5, %v753_v11  ;;  %v400_v12 = vsub.f32 %v191_v6, %v749_v8  ;;  %v193_v14 = vld [vmem:[#allocation5 + $0x4d8] sm:$0xff] }
  0x65   :  { %567 = vst [vmem:[#allocation7 + $0x400] sm:$0xff] %v375_v24  ;;  %568 = vst [vmem:[#allocation7 + $0x408] sm:$0xff] %v376_v25  ;;  %v401_v13 = vsub.f32 %v192_v7, %v751_v9  ;;  %v194_v15 = vld [vmem:[#allocation5 + $0x4e0] sm:$0xff]  ;;  %v195_v16 = vld [vmem:[#allocation5 + $0x4e8] sm:$0xff]  ;;  %v402_v17 = vsub.f32 %v193_v14, %v753_v11 }
  0x66   :  { %569 = vst [vmem:[#allocation7 + $0x410] sm:$0xff] %v377_v26  ;;  %570 = vst [vmem:[#allocation7 + $0x418] sm:$0xff] %v378_v30  ;;  %v403_v18 = vsub.f32 %v194_v15, %v749_v8  ;;  %v404_v19 = vsub.f32 %v195_v16, %v751_v9  ;;  %v196_v20 = vld [vmem:[#allocation5 + $0x4f0] sm:$0xff]  ;;  %v197_v21 = vld [vmem:[#allocation5 + $0x4f8] sm:$0xff] }
  0x67   :  { %571 = vst [vmem:[#allocation7 + $0x420] sm:$0xff] %v379_v31  ;;  %572 = vst [vmem:[#allocation7 + $0x428] sm:$0xff] %v380_v32  ;;  %v198_v22 = vld [vmem:[#allocation5 + $0x500] sm:$0xff]  ;;  %v405_v23 = vsub.f32 %v196_v20, %v753_v11  ;;  %v406_v24 = vsub.f32 %v197_v21, %v749_v8  ;;  %v199_v26 = vld [vmem:[#allocation5 + $0x508] sm:$0xff] }
  0x68   :  { %573 = vst [vmem:[#allocation7 + $0x430] sm:$0xff] %v381_v36  ;;  %574 = vst [vmem:[#allocation7 + $0x438] sm:$0xff] %v382_v37  ;;  %v407_v25 = vsub.f32 %v198_v22, %v751_v9  ;;  %v200_v27 = vld [vmem:[#allocation5 + $0x510] sm:$0xff]  ;;  %v201_v28 = vld [vmem:[#allocation5 + $0x518] sm:$0xff]  ;;  %v408_v29 = vsub.f32 %v199_v26, %v753_v11 }
  0x69   :  { %575 = vst [vmem:[#allocation7 + $0x440] sm:$0xff] %v383_v38  ;;  %576 = vst [vmem:[#allocation7 + $0x448] sm:$0xff] %v384_v42  ;;  %v409_v30 = vsub.f32 %v200_v27, %v749_v8  ;;  %v410_v31 = vsub.f32 %v201_v28, %v751_v9  ;;  %v202_v32 = vld [vmem:[#allocation5 + $0x520] sm:$0xff]  ;;  %v203_v33 = vld [vmem:[#allocation5 + $0x528] sm:$0xff] }
  0x6a   :  { %577 = vst [vmem:[#allocation7 + $0x450] sm:$0xff] %v385_v43  ;;  %578 = vst [vmem:[#allocation7 + $0x458] sm:$0xff] %v386_v44  ;;  %v204_v34 = vld [vmem:[#allocation5 + $0x530] sm:$0xff]  ;;  %v411_v35 = vsub.f32 %v202_v32, %v753_v11  ;;  %v412_v36 = vsub.f32 %v203_v33, %v749_v8  ;;  %v205_v38 = vld [vmem:[#allocation5 + $0x538] sm:$0xff] }
  0x6b   :  { %579 = vst [vmem:[#allocation7 + $0x460] sm:$0xff] %v387_v48  ;;  %580 = vst [vmem:[#allocation7 + $0x468] sm:$0xff] %v388_v49  ;;  %v413_v37 = vsub.f32 %v204_v34, %v751_v9  ;;  %v206_v39 = vld [vmem:[#allocation5 + $0x540] sm:$0xff]  ;;  %v207_v40 = vld [vmem:[#allocation5 + $0x548] sm:$0xff]  ;;  %v414_v41 = vsub.f32 %v205_v38, %v753_v11 }
  0x6c   :  { %581 = vst [vmem:[#allocation7 + $0x470] sm:$0xff] %v389_v50  ;;  %582 = vst [vmem:[#allocation7 + $0x478] sm:$0xff] %v390_v54  ;;  %v415_v42 = vsub.f32 %v206_v39, %v749_v8  ;;  %v416_v43 = vsub.f32 %v207_v40, %v751_v9  ;;  %v208_v44 = vld [vmem:[#allocation5 + $0x550] sm:$0xff]  ;;  %v209_v45 = vld [vmem:[#allocation5 + $0x558] sm:$0xff] }
  0x6d   :  { %583 = vst [vmem:[#allocation7 + $0x480] sm:$0xff] %v391_v55  ;;  %584 = vst [vmem:[#allocation7 + $0x488] sm:$0xff] %v392_v56  ;;  %v210_v46 = vld [vmem:[#allocation5 + $0x560] sm:$0xff]  ;;  %v417_v47 = vsub.f32 %v208_v44, %v753_v11  ;;  %v418_v48 = vsub.f32 %v209_v45, %v749_v8  ;;  %v211_v50 = vld [vmem:[#allocation5 + $0x568] sm:$0xff] }
  0x6e   :  { %585 = vst [vmem:[#allocation7 + $0x490] sm:$0xff] %v393_v60  ;;  %586 = vst [vmem:[#allocation7 + $0x498] sm:$0xff] %v394_v61  ;;  %v419_v49 = vsub.f32 %v210_v46, %v751_v9  ;;  %v212_v51 = vld [vmem:[#allocation5 + $0x570] sm:$0xff]  ;;  %v213_v52 = vld [vmem:[#allocation5 + $0x578] sm:$0xff]  ;;  %v420_v53 = vsub.f32 %v211_v50, %v753_v11 }
  0x6f   :  { %587 = vst [vmem:[#allocation7 + $0x4a0] sm:$0xff] %v395_v62  ;;  %588 = vst [vmem:[#allocation7 + $0x4a8] sm:$0xff] %v396_v2  ;;  %v421_v54 = vsub.f32 %v212_v51, %v749_v8  ;;  %v422_v55 = vsub.f32 %v213_v52, %v751_v9  ;;  %v214_v56 = vld [vmem:[#allocation5 + $0x580] sm:$0xff]  ;;  %v215_v57 = vld [vmem:[#allocation5 + $0x588] sm:$0xff] }
  0x70   :  { %589 = vst [vmem:[#allocation7 + $0x4b0] sm:$0xff] %v397_v3  ;;  %590 = vst [vmem:[#allocation7 + $0x4b8] sm:$0xff] %v398_v4  ;;  %v216_v58 = vld [vmem:[#allocation5 + $0x590] sm:$0xff]  ;;  %v423_v59 = vsub.f32 %v214_v56, %v753_v11  ;;  %v424_v60 = vsub.f32 %v215_v57, %v749_v8  ;;  %v217_v62 = vld [vmem:[#allocation5 + $0x598] sm:$0xff] }
  0x71   :  { %591 = vst [vmem:[#allocation7 + $0x4c0] sm:$0xff] %v399_v10  ;;  %592 = vst [vmem:[#allocation7 + $0x4c8] sm:$0xff] %v400_v12  ;;  %v425_v61 = vsub.f32 %v216_v58, %v751_v9  ;;  %v218_v63 = vld [vmem:[#allocation5 + $0x5a0] sm:$0xff]  ;;  %v219_v0 = vld [vmem:[#allocation5 + $0x5a8] sm:$0xff]  ;;  %v426_v1 = vsub.f32 %v217_v62, %v753_v11 }
  0x72   :  { %593 = vst [vmem:[#allocation7 + $0x4d0] sm:$0xff] %v401_v13  ;;  %594 = vst [vmem:[#allocation7 + $0x4d8] sm:$0xff] %v402_v17  ;;  %v427_v2 = vsub.f32 %v218_v63, %v749_v8  ;;  %v428_v3 = vsub.f32 %v219_v0, %v751_v9  ;;  %v220_v4 = vld [vmem:[#allocation5 + $0x5b0] sm:$0xff]  ;;  %v221_v5 = vld [vmem:[#allocation5 + $0x5b8] sm:$0xff] }
  0x73   :  { %595 = vst [vmem:[#allocation7 + $0x4e0] sm:$0xff] %v403_v18  ;;  %596 = vst [vmem:[#allocation7 + $0x4e8] sm:$0xff] %v404_v19  ;;  %v222_v6 = vld [vmem:[#allocation5 + $0x5c0] sm:$0xff]  ;;  %v429_v7 = vsub.f32 %v220_v4, %v753_v11  ;;  %v430_v10 = vsub.f32 %v221_v5, %v749_v8  ;;  %v223_v13 = vld [vmem:[#allocation5 + $0x5c8] sm:$0xff] }
  0x74   :  { %597 = vst [vmem:[#allocation7 + $0x4f0] sm:$0xff] %v405_v23  ;;  %598 = vst [vmem:[#allocation7 + $0x4f8] sm:$0xff] %v406_v24  ;;  %v431_v12 = vsub.f32 %v222_v6, %v751_v9  ;;  %v224_v14 = vld [vmem:[#allocation5 + $0x5d0] sm:$0xff]  ;;  %v225_v15 = vld [vmem:[#allocation5 + $0x5d8] sm:$0xff]  ;;  %v432_v16 = vsub.f32 %v223_v13, %v753_v11 }
  0x75   :  { %599 = vst [vmem:[#allocation7 + $0x500] sm:$0xff] %v407_v25  ;;  %600 = vst [vmem:[#allocation7 + $0x508] sm:$0xff] %v408_v29  ;;  %v433_v17 = vsub.f32 %v224_v14, %v749_v8  ;;  %v434_v18 = vsub.f32 %v225_v15, %v751_v9  ;;  %v226_v19 = vld [vmem:[#allocation5 + $0x5e0] sm:$0xff]  ;;  %v227_v20 = vld [vmem:[#allocation5 + $0x5e8] sm:$0xff] }
  0x76   :  { %601 = vst [vmem:[#allocation7 + $0x510] sm:$0xff] %v409_v30  ;;  %602 = vst [vmem:[#allocation7 + $0x518] sm:$0xff] %v410_v31  ;;  %v228_v21 = vld [vmem:[#allocation5 + $0x5f0] sm:$0xff]  ;;  %v435_v22 = vsub.f32 %v226_v19, %v753_v11  ;;  %v436_v23 = vsub.f32 %v227_v20, %v749_v8  ;;  %v229_v25 = vld [vmem:[#allocation5 + $0x5f8] sm:$0xff] }
  0x77   :  { %603 = vst [vmem:[#allocation7 + $0x520] sm:$0xff] %v411_v35  ;;  %604 = vst [vmem:[#allocation7 + $0x528] sm:$0xff] %v412_v36  ;;  %v437_v24 = vsub.f32 %v228_v21, %v751_v9  ;;  %v438_v26 = vsub.f32 %v229_v25, %v753_v11 }
  0x78   :  { %605 = vst [vmem:[#allocation7 + $0x530] sm:$0xff] %v413_v37  ;;  %606 = vst [vmem:[#allocation7 + $0x538] sm:$0xff] %v414_v41 }
  0x79   :  { %607 = vst [vmem:[#allocation7 + $0x540] sm:$0xff] %v415_v42  ;;  %608 = vst [vmem:[#allocation7 + $0x548] sm:$0xff] %v416_v43 }
  0x7a   :  { %609 = vst [vmem:[#allocation7 + $0x550] sm:$0xff] %v417_v47  ;;  %610 = vst [vmem:[#allocation7 + $0x558] sm:$0xff] %v418_v48 }
  0x7b   :  { %611 = vst [vmem:[#allocation7 + $0x560] sm:$0xff] %v419_v49  ;;  %612 = vst [vmem:[#allocation7 + $0x568] sm:$0xff] %v420_v53 }
  0x7c   :  { %613 = vst [vmem:[#allocation7 + $0x570] sm:$0xff] %v421_v54  ;;  %614 = vst [vmem:[#allocation7 + $0x578] sm:$0xff] %v422_v55 }
  0x7d   :  { %615 = vst [vmem:[#allocation7 + $0x580] sm:$0xff] %v423_v59  ;;  %616 = vst [vmem:[#allocation7 + $0x588] sm:$0xff] %v424_v60 }
  0x7e   :  { %617 = vst [vmem:[#allocation7 + $0x590] sm:$0xff] %v425_v61  ;;  %618 = vst [vmem:[#allocation7 + $0x598] sm:$0xff] %v426_v1 }
  0x7f   :  { %619 = vst [vmem:[#allocation7 + $0x5a0] sm:$0xff] %v427_v2  ;;  %620 = vst [vmem:[#allocation7 + $0x5a8] sm:$0xff] %v428_v3 }
  0x80   :  { %621 = vst [vmem:[#allocation7 + $0x5b0] sm:$0xff] %v429_v7  ;;  %622 = vst [vmem:[#allocation7 + $0x5b8] sm:$0xff] %v430_v10 }
  0x81   :  { %623 = vst [vmem:[#allocation7 + $0x5c0] sm:$0xff] %v431_v12  ;;  %624 = vst [vmem:[#allocation7 + $0x5c8] sm:$0xff] %v432_v16 }
  0x82   :  { %625 = vst [vmem:[#allocation7 + $0x5d0] sm:$0xff] %v433_v17  ;;  %626 = vst [vmem:[#allocation7 + $0x5d8] sm:$0xff] %v434_v18 }
  0x83   :  { %627 = vst [vmem:[#allocation7 + $0x5e0] sm:$0xff] %v435_v22  ;;  %628 = vst [vmem:[#allocation7 + $0x5e8] sm:$0xff] %v436_v23 }
  0x84   :  { %629 = vst [vmem:[#allocation7 + $0x5f0] sm:$0xff] %v437_v24  ;;  %630 = vst [vmem:[#allocation7 + $0x5f8] sm:$0xff] %v438_v26 }
  0x85   :  { %705 = shalt.err (!%p702_p0)
}
  0x86   :  { %642 = dma.vmem_to_hbm [thread:$0]  %s637_s1, 24576, %s955_s2, [#allocation4], %s722_s18, %s722_s18, %s723_s19  }
  0x87   :  { %718 = dma.done.wait [#allocation4], 24576  }
  0x88   :  { %719 = vsyncadd [#allocation4], 4294942720 }
  0x89   :  { %646 = vsyncpa [#allocation3], 1 }
  0x8a   :  { %647 = vsyncpa [#allocation6], 1 }
  0x8b   :  { %648 = vsyncpa [#allocation4], 1 }

</bundles_post_ra>
